<compile_context>
chip_gen: v7x
topology: tpu7x:2x2x1
jax: 0.10.0
libtpu: 0.0.40
codegen_flags: <defaults>
</compile_context>

<pallas_src>
import functools

import jax
import jax.numpy as jnp
from jax import lax
from jax.experimental import pallas as pl
from jax.experimental.pallas import tpu as pltpu

# -------- small, module-consistent demo config (embed divisible by heads) ----
BATCH = 2
SEQ = 8
EMBED = 32
NUM_HEADS = 4
HEAD_DIM = EMBED // NUM_HEADS  # 8


def _round_up(x, m):
    return (x + m - 1) // m * m


def mha_kernel(x_ref, wqkv_ref, bqkv_ref, wproj_ref, bproj_ref,
               out_ref, attn_ref, *, n_valid):
    """Grid step = (batch block i, head h).

    x_ref:     (BB, Np, E)      tokens (compute dtype), zero-padded to Np
    wqkv_ref:  (1, E, 3D)       this head's [q|k|v] projection columns,
                                q columns pre-scaled by D**-0.5
    bqkv_ref:  (1, 1, 3D)       matching bias (f32, q part pre-scaled)
    wproj_ref: (1, D, E)        this head's rows of the output projection
    bproj_ref: (1, E)           output-projection bias (f32)
    out_ref:   (BB, Np, E) f32  same block revisited across the head axis
                                (acts as the cross-head accumulator)
    attn_ref:  (BB, 1, Np, Np)  f32 attention map for this head (lane-dense Np)
    """
    head = pl.program_id(1)
    n_heads = pl.num_programs(1)
    bb, n_pad, e_dim = x_ref.shape
    d_dim = wproj_ref.shape[1]
    cdt = x_ref.dtype                      # MXU operand dtype (bf16 by default)

    # ---- per-head QKV projection: one (BB*Np, E) @ (E, 3D) MXU matmul -------
    x2 = x_ref[...].reshape(bb * n_pad, e_dim)
    qkv = jnp.dot(x2, wqkv_ref[0], preferred_element_type=jnp.float32)
    qkv = qkv + bqkv_ref[0, 0]             # (BB*Np, 3D) f32; tiny live range

    q = qkv[:, 0 * d_dim:1 * d_dim].reshape(bb, n_pad, d_dim)  # scale folded in
    k = qkv[:, 1 * d_dim:2 * d_dim].reshape(bb, n_pad, d_dim)
    v = qkv[:, 2 * d_dim:3 * d_dim].reshape(bb, n_pad, d_dim)

    # ---- scores for the whole batch block, contracting on D (no k^T) --------
    scores = lax.dot_general(
        q.astype(cdt), k.astype(cdt), (((2,), (2,)), ((0,), (0,))),
        preferred_element_type=jnp.float32)            # (BB, Np, Np) f32

    # Mask the zero-padded key positions so softmax matches the unpadded ref.
    if n_valid < n_pad:
        kv_pos = lax.broadcasted_iota(jnp.int32, (bb, n_pad, n_pad), 2)
        scores = jnp.where(kv_pos < n_valid, scores, jnp.float32(-1e30))

    # ---- numerically stable softmax (f32 stats, exact reciprocal over only
    # BB*Np values so the returned attention maps stay close to the reference).
    m = jnp.max(scores, axis=-1, keepdims=True)
    e = jnp.exp(scores - m)
    denom = jnp.sum(e, axis=-1, keepdims=True)
    attn = e * pl.reciprocal(denom, approx=False)

    # TODO(synk): nn.Dropout(0.1) on the attention map is identity in eval
    # mode; train-time stochastic dropout is not emitted.

    # ---- lane-dense (Np is a multiple of 128) single write of this head's map
    attn_ref[...] = attn.reshape(bb, 1, n_pad, n_pad)

    # ---- attention @ v, batched over the batch block -------------------------
    av = lax.dot_general(
        attn.astype(cdt), v.astype(cdt), (((2,), (1,)), ((0,), (0,))),
        preferred_element_type=jnp.float32)            # (BB, Np, D)

    # ---- this head's slice of the output projection, accumulated in out_ref -
    contrib = jnp.dot(av.reshape(bb * n_pad, d_dim).astype(cdt), wproj_ref[0],
                      preferred_element_type=jnp.float32)   # (BB*Np, E)

    @pl.when(head == 0)
    def _init():
        out_ref[...] = jnp.zeros_like(out_ref)

    out_ref[...] += contrib.reshape(bb, n_pad, e_dim)

    @pl.when(head == n_heads - 1)
    def _finalize():
        out_ref[...] += bproj_ref[0]


def multi_head_attention(x, w_qkv, b_qkv, w_proj, b_proj, *,
                         num_heads=NUM_HEADS, batch_block=None,
                         compute_dtype=jnp.bfloat16):
    """x: (B, N, E). Weights in PyTorch nn.Linear convention:
       w_qkv (3E, E), b_qkv (3E,), w_proj (E, E), b_proj (E,).
    Returns (out (B, N, E) f32, attention (B, H, N, N) f32)."""
    B, N, E = x.shape
    H = num_heads
    D = E // H
    assert H * D == E

    # Default batch block: >= 2 steps on the (parallel) batch axis so both v7x
    # TensorCores get work.  Callers with larger B should pick BB so BB*Np
    # feeds full MXU tiles (>=256 rows) and the grid has >=4 steps.
    BB = batch_block if batch_block is not None else max(1, B // 2)
    assert B % BB == 0

    # Pad tokens to a multiple of 128: lane-dense attention-map writeback (its
    # last dim) and (8,128)-aligned layouts throughout.  Padded keys are masked
    # inside the kernel; the wrapper strips padded rows/cols afterwards.
    n_pad = _round_up(N, 128)
    x_p = x if n_pad == N else jnp.pad(x, ((0, 0), (0, n_pad - N), (0, 0)))
    x_p = x_p.astype(compute_dtype)

    # ---- one-time parameter layout fix-ups (plain JAX glue) -----------------
    # The module's rearrange 'b n (h d qkv) -> qkv b h n d' means out-features
    # are packed (h, d, qkv) with qkv fastest.  De-interleave to per-head
    # (E, 3D) = [q_h | k_h | v_h] blocks (transposed for x @ W) and fold the
    # 1/sqrt(D) attention scale into the q weight and bias.
    scale = D ** (-0.5)
    w4 = w_qkv.reshape(H, D, 3, E)                          # (H, D, qkv, E)
    wqkv_heads = jnp.concatenate(
        [jnp.swapaxes(w4[:, :, 0, :], 1, 2) * scale,        # q, pre-scaled
         jnp.swapaxes(w4[:, :, 1, :], 1, 2),                # k
         jnp.swapaxes(w4[:, :, 2, :], 1, 2)],               # v
        axis=-1).astype(compute_dtype)                      # (H, E, 3D)
    b4 = b_qkv.reshape(H, D, 3)
    bqkv_heads = jnp.concatenate(
        [b4[:, :, 0] * scale, b4[:, :, 1], b4[:, :, 2]],
        axis=-1).reshape(H, 1, 3 * D).astype(jnp.float32)   # (H, 1, 3D)

    # Output projection: in-features are (h, d)-ordered, so head h owns rows
    # [h*D:(h+1)*D] of w_proj.T; the cross-head sum happens in the kernel.
    wproj_heads = w_proj.T.reshape(H, D, E).astype(compute_dtype)  # (H, D, E)
    bproj_2d = b_proj.reshape(1, E).astype(jnp.float32)

    out_shapes = (
        jax.ShapeDtypeStruct((B, n_pad, E), jnp.float32),        # tokens
        jax.ShapeDtypeStruct((B, H, n_pad, n_pad), jnp.float32), # attn maps
    )

    grid = (B // BB, H)   # batch blocks (parallel) x heads (out-reduction, last)

    grid_spec = pltpu.PrefetchScalarGridSpec(
        num_scalar_prefetch=0,
        grid=grid,
        in_specs=[
            pl.BlockSpec((BB, n_pad, E), lambda i, h: (i, 0, 0)),    # x (resident over h)
            pl.BlockSpec((1, E, 3 * D), lambda i, h: (h, 0, 0)),     # per-head qkv W
            pl.BlockSpec((1, 1, 3 * D), lambda i, h: (h, 0, 0)),     # per-head qkv b
            pl.BlockSpec((1, D, E), lambda i, h: (h, 0, 0)),         # per-head proj W
            pl.BlockSpec((1, E), lambda i, h: (0, 0)),               # proj bias
        ],
        out_specs=[
            pl.BlockSpec((BB, n_pad, E), lambda i, h: (i, 0, 0)),            # revisited over h
            pl.BlockSpec((BB, 1, n_pad, n_pad), lambda i, h: (i, h, 0, 0)),  # per-head map
        ],
    )

    # Explicit VMEM budget: double-buffered blocks + headroom for in-kernel
    # temporaries (scores/exp/attn), clamped to v7x's 64 MiB physical VMEM.
    isz = jnp.dtype(compute_dtype).itemsize
    blk_bytes = (
        2 * BB * n_pad * E * isz                                   # x blocks
        + 2 * (E * 3 * D * isz + 3 * D * 4 + D * E * isz + E * 4)  # weights/biases
        + 2 * BB * n_pad * E * 4                                   # out block
        + 2 * BB * n_pad * n_pad * 4                               # attn block
    )
    tmp_bytes = 4 * BB * n_pad * n_pad * 4 + 4 * BB * n_pad * (E + 3 * D) * 4
    vmem_limit = int(min(64 * 2**20, max(32 * 2**20, 2 * (blk_bytes + tmp_bytes))))

    out_p, attn_p = pl.pallas_call(
        functools.partial(mha_kernel, n_valid=N),
        out_shape=out_shapes,
        grid_spec=grid_spec,
        compiler_params=pltpu.CompilerParams(
            dimension_semantics=("parallel", "arbitrary"),
            vmem_limit_bytes=vmem_limit),
    )(x_p, wqkv_heads, bqkv_heads, wproj_heads, bproj_2d)

    # Strip the sequence padding (plain XLA slices).
    return out_p[:, :N, :], attn_p[:, :, :N, :N]


def reference_mha(x, w_qkv, b_qkv, w_proj, b_proj, num_heads=NUM_HEADS):
    """Pure-JAX f32 reference reproducing the PyTorch module exactly (eval)."""
    B, N, E = x.shape
    H = num_heads
    D = E // H
    qkv = x @ w_qkv.T + b_qkv                                  # (B, N, 3E)
    qkv = qkv.reshape(B, N, H, D, 3).transpose(4, 0, 2, 1, 3)  # qkv b h n d
    q, k, v = qkv[0], qkv[1], qkv[2]
    scores = jnp.einsum("bhnd,bhmd->bhnm", q, k) * (D ** -0.5)
    attn = jax.nn.softmax(scores, axis=-1)
    out = jnp.einsum("bhnm,bhmd->bhnd", attn, v)
    out = out.transpose(0, 2, 1, 3).reshape(B, N, E)
    return out @ w_proj.T + b_proj, attn


if __name__ == "__main__":
    key = jax.random.PRNGKey(0)
    kx, k1, k2, k3, k4 = jax.random.split(key, 5)

    x = jax.random.normal(kx, (BATCH, SEQ, EMBED), dtype=jnp.float32)

    # Deterministic init (nn.Linear shapes: weight (out, in), bias (out,))
    w_qkv = jax.random.normal(k1, (3 * EMBED, EMBED), dtype=jnp.float32) * 0.05
    b_qkv = jax.random.normal(k2, (3 * EMBED,), dtype=jnp.float32) * 0.05
    w_proj = jax.random.normal(k3, (EMBED, EMBED), dtype=jnp.float32) * 0.05
    b_proj = jax.random.normal(k4, (EMBED,), dtype=jnp.float32) * 0.05

    out, attn = multi_head_attention(x, w_qkv, b_qkv, w_proj, b_proj)
    jax.block_until_ready(out)
    jax.block_until_ready(attn)

    ref_out, ref_attn = reference_mha(x, w_qkv, b_qkv, w_proj, b_proj)

    assert out.shape == (BATCH, SEQ, EMBED)
    assert attn.shape == (BATCH, NUM_HEADS, SEQ, SEQ)
    # Tolerances absorb bf16 rounding of the MXU operands (accumulation and
    # softmax statistics are f32; compute_dtype=jnp.float32 recovers ~1e-5).
    assert jnp.allclose(out, ref_out, atol=2e-2, rtol=2e-2)
    assert jnp.allclose(attn, ref_attn, atol=1e-2, rtol=1e-2)

    print("KERNEL_OK")
</pallas_src>

<mosaic_0001>
module attributes {stable_mosaic.version = 11 : i64} {
  func.func @mha_kernel(%arg0: i32, %arg1: i32, %arg2: memref<1x128x32xbf16, #tpu.memory_space<vmem>>, %arg3: memref<1x32x24xbf16, #tpu.memory_space<vmem>>, %arg4: memref<1x1x24xf32, #tpu.memory_space<vmem>>, %arg5: memref<1x8x32xbf16, #tpu.memory_space<vmem>>, %arg6: memref<1x32xf32, #tpu.memory_space<vmem>>, %arg7: memref<1x128x32xf32, #tpu.memory_space<vmem>>, %arg8: memref<1x1x128x128xf32, #tpu.memory_space<vmem>>) attributes {dimension_semantics = [#tpu.dimension_semantics<parallel>, #tpu.dimension_semantics<arbitrary>], iteration_bounds = array<i64: 2, 4>, scalar_prefetch = 0 : i64, scratch_operands = 0 : i64, tpu.core_type = #tpu.core_type<tc>, window_params = [{transform_indices = @transform_0, window_bounds = array<i64: 1, 128, 32>}, {transform_indices = @transform_1, window_bounds = array<i64: 1, 32, 24>}, {transform_indices = @transform_2, window_bounds = array<i64: 1, 1, 24>}, {transform_indices = @transform_3, window_bounds = array<i64: 1, 8, 32>}, {pipeline_mode = #tpu.pipeline_mode<synchronous>, transform_indices = @transform_4, window_bounds = array<i64: 1, 32>}, {transform_indices = @transform_5, window_bounds = array<i64: 1, 128, 32>}, {transform_indices = @transform_6, window_bounds = array<i64: 1, 1, 128, 128>}]} {
    %c0 = arith.constant 0 : index
    %c0_0 = arith.constant 0 : index
    %c0_1 = arith.constant 0 : index
    %0 = vector.load %arg2[%c0, %c0_0, %c0_1] : memref<1x128x32xbf16, #tpu.memory_space<vmem>>, vector<1x128x32xbf16>
    %1 = vector.shape_cast %0 : vector<1x128x32xbf16> to vector<128x32xbf16>
    %c0_2 = arith.constant 0 : index
    %c0_3 = arith.constant 0 : index
    %c0_4 = arith.constant 0 : index
    %2 = vector.load %arg3[%c0_2, %c0_3, %c0_4] : memref<1x32x24xbf16, #tpu.memory_space<vmem>>, vector<1x32x24xbf16>
    %3 = vector.shape_cast %2 : vector<1x32x24xbf16> to vector<32x24xbf16>
    %cst = arith.constant dense<0.000000e+00> : vector<128x24xf32>
    %4 = tpu.matmul %1, %3, %cst {dimension_numbers = #tpu.dot_dimension_numbers<[1], [0], [0], [1], [0, 0, 1, 1], [], []>} : vector<128x32xbf16>, vector<32x24xbf16>, vector<128x24xf32> -> vector<128x24xf32>
    %c0_5 = arith.constant 0 : index
    %c0_6 = arith.constant 0 : index
    %c0_7 = arith.constant 0 : index
    %5 = vector.load %arg4[%c0_5, %c0_6, %c0_7] : memref<1x1x24xf32, #tpu.memory_space<vmem>>, vector<1x1x24xf32>
    %6 = vector.shape_cast %5 : vector<1x1x24xf32> to vector<24xf32>
    %7 = vector.shape_cast %6 : vector<24xf32> to vector<1x24xf32>
    %8 = vector.broadcast %7 : vector<1x24xf32> to vector<128x24xf32>
    %9 = arith.addf %4, %8 : vector<128x24xf32>
    %10 = vector.extract_strided_slice %9 {offsets = [0, 0], sizes = [128, 8], strides = [1, 1]} : vector<128x24xf32> to vector<128x8xf32>
    %11 = vector.shape_cast %10 : vector<128x8xf32> to vector<1x128x8xf32>
    %12 = vector.extract_strided_slice %9 {offsets = [0, 8], sizes = [128, 8], strides = [1, 1]} : vector<128x24xf32> to vector<128x8xf32>
    %13 = vector.shape_cast %12 : vector<128x8xf32> to vector<1x128x8xf32>
    %14 = vector.extract_strided_slice %9 {offsets = [0, 16], sizes = [128, 8], strides = [1, 1]} : vector<128x24xf32> to vector<128x8xf32>
    %15 = vector.shape_cast %14 : vector<128x8xf32> to vector<1x128x8xf32>
    %16 = arith.truncf %11 : vector<1x128x8xf32> to vector<1x128x8xbf16>
    %17 = arith.truncf %13 : vector<1x128x8xf32> to vector<1x128x8xbf16>
    %cst_8 = arith.constant dense<0.000000e+00> : vector<1x128x128xf32>
    %18 = tpu.matmul %16, %17, %cst_8 {dimension_numbers = #tpu.dot_dimension_numbers<[2], [2], [1], [1], [0, 0, 0, 1, 1, 1], [0], [0]>} : vector<1x128x8xbf16>, vector<1x128x8xbf16>, vector<1x128x128xf32> -> vector<1x128x128xf32>
    %19 = tpu.iota {dimensions = array<i32: 2>} : vector<1x128x128xi32>
    %c8_i32 = arith.constant 8 : i32
    %20 = vector.broadcast %c8_i32 : i32 to vector<1x128x128xi32>
    %21 = arith.cmpi slt, %19, %20 : vector<1x128x128xi32>
    %cst_9 = arith.constant -1.000000e+30 : f32
    %22 = vector.broadcast %cst_9 : f32 to vector<1x128x128xf32>
    %23 = arith.select %21, %18, %22 : vector<1x128x128xi1>, vector<1x128x128xf32>
    %cst_10 = arith.constant dense<0xFF800000> : vector<1x128xf32>
    %24 = vector.multi_reduction <maximumf>, %23, %cst_10 [2] : vector<1x128x128xf32> to vector<1x128xf32>
    %25 = vector.shape_cast %24 : vector<1x128xf32> to vector<1x128x1xf32>
    %26 = vector.broadcast %25 : vector<1x128x1xf32> to vector<1x128x128xf32>
    %27 = arith.subf %23, %26 : vector<1x128x128xf32>
    %28 = math.exp %27 : vector<1x128x128xf32>
    %cst_11 = arith.constant dense<0.000000e+00> : vector<1x128xf32>
    %29 = vector.multi_reduction <add>, %28, %cst_11 [2] : vector<1x128x128xf32> to vector<1x128xf32>
    %30 = vector.shape_cast %29 : vector<1x128xf32> to vector<1x128x1xf32>
    %31 = tpu.reciprocal %30 : vector<1x128x1xf32> -> vector<1x128x1xf32>
    %32 = vector.broadcast %31 : vector<1x128x1xf32> to vector<1x128x128xf32>
    %33 = arith.mulf %28, %32 : vector<1x128x128xf32>
    %34 = vector.shape_cast %33 : vector<1x128x128xf32> to vector<1x1x128x128xf32>
    %c0_12 = arith.constant 0 : index
    %c0_13 = arith.constant 0 : index
    %c0_14 = arith.constant 0 : index
    %c0_15 = arith.constant 0 : index
    %35 = vector.load %arg8[%c0_12, %c0_13, %c0_14, %c0_15] : memref<1x1x128x128xf32, #tpu.memory_space<vmem>>, vector<1x1x128x128xf32>
    tpu.vector_store %arg8[%c0_12, %c0_13, %c0_14, %c0_15], %34 {strides = array<i32>} : memref<1x1x128x128xf32, #tpu.memory_space<vmem>>, vector<1x1x128x128xf32>,
    %36 = arith.truncf %33 : vector<1x128x128xf32> to vector<1x128x128xbf16>
    %37 = arith.truncf %15 : vector<1x128x8xf32> to vector<1x128x8xbf16>
    %cst_16 = arith.constant dense<0.000000e+00> : vector<1x128x8xf32>
    %38 = tpu.matmul %36, %37, %cst_16 {dimension_numbers = #tpu.dot_dimension_numbers<[2], [1], [1], [2], [0, 0, 0, 1, 1, 2], [0], [0]>} : vector<1x128x128xbf16>, vector<1x128x8xbf16>, vector<1x128x8xf32> -> vector<1x128x8xf32>
    %39 = vector.shape_cast %38 : vector<1x128x8xf32> to vector<128x8xf32>
    %40 = arith.truncf %39 : vector<128x8xf32> to vector<128x8xbf16>
    %c0_17 = arith.constant 0 : index
    %c0_18 = arith.constant 0 : index
    %c0_19 = arith.constant 0 : index
    %41 = vector.load %arg5[%c0_17, %c0_18, %c0_19] : memref<1x8x32xbf16, #tpu.memory_space<vmem>>, vector<1x8x32xbf16>
    %42 = vector.shape_cast %41 : vector<1x8x32xbf16> to vector<8x32xbf16>
    %cst_20 = arith.constant dense<0.000000e+00> : vector<128x32xf32>
    %43 = tpu.matmul %40, %42, %cst_20 {dimension_numbers = #tpu.dot_dimension_numbers<[1], [0], [0], [1], [0, 0, 1, 1], [], []>} : vector<128x8xbf16>, vector<8x32xbf16>, vector<128x32xf32> -> vector<128x32xf32>
    %c0_i32 = arith.constant 0 : i32
    %44 = arith.cmpi eq, %arg1, %c0_i32 : i32
    %45 = arith.extui %44 : i1 to i32
    %c0_i32_21 = arith.constant 0 : i32
    %46 = arith.cmpi ne, %45, %c0_i32_21 : i32
    scf.if %46 {
      %cst_29 = arith.constant 0.000000e+00 : f32
      %54 = vector.broadcast %cst_29 : f32 to vector<1x128x32xf32>
      %c0_30 = arith.constant 0 : index
      %c0_31 = arith.constant 0 : index
      %c0_32 = arith.constant 0 : index
      %55 = vector.load %arg7[%c0_30, %c0_31, %c0_32] : memref<1x128x32xf32, #tpu.memory_space<vmem>>, vector<1x128x32xf32>
      tpu.vector_store %arg7[%c0_30, %c0_31, %c0_32], %54 {strides = array<i32>} : memref<1x128x32xf32, #tpu.memory_space<vmem>>, vector<1x128x32xf32>,
    } else {
    }
    %c0_22 = arith.constant 0 : index
    %c0_23 = arith.constant 0 : index
    %c0_24 = arith.constant 0 : index
    %47 = vector.load %arg7[%c0_22, %c0_23, %c0_24] : memref<1x128x32xf32, #tpu.memory_space<vmem>>, vector<1x128x32xf32>
    %48 = vector.shape_cast %43 : vector<128x32xf32> to vector<1x128x32xf32>
    %49 = arith.addf %47, %48 : vector<1x128x32xf32>
    %c0_25 = arith.constant 0 : index
    %c0_26 = arith.constant 0 : index
    %c0_27 = arith.constant 0 : index
    %50 = vector.load %arg7[%c0_25, %c0_26, %c0_27] : memref<1x128x32xf32, #tpu.memory_space<vmem>>, vector<1x128x32xf32>
    tpu.vector_store %arg7[%c0_25, %c0_26, %c0_27], %49 {strides = array<i32>} : memref<1x128x32xf32, #tpu.memory_space<vmem>>, vector<1x128x32xf32>,
    %c3_i32 = arith.constant 3 : i32
    %51 = arith.cmpi eq, %arg1, %c3_i32 : i32
    %52 = arith.extui %51 : i1 to i32
    %c0_i32_28 = arith.constant 0 : i32
    %53 = arith.cmpi ne, %52, %c0_i32_28 : i32
    scf.if %53 {
      %c0_29 = arith.constant 0 : index
      %c0_30 = arith.constant 0 : index
      %c0_31 = arith.constant 0 : index
      %54 = vector.load %arg7[%c0_29, %c0_30, %c0_31] : memref<1x128x32xf32, #tpu.memory_space<vmem>>, vector<1x128x32xf32>
      %c0_32 = arith.constant 0 : index
      %c0_33 = arith.constant 0 : index
      %55 = vector.load %arg6[%c0_32, %c0_33] : memref<1x32xf32, #tpu.memory_space<vmem>>, vector<1x32xf32>
      %56 = vector.shape_cast %55 : vector<1x32xf32> to vector<32xf32>
      %57 = vector.shape_cast %56 : vector<32xf32> to vector<1x1x32xf32>
      %58 = vector.broadcast %57 : vector<1x1x32xf32> to vector<1x128x32xf32>
      %59 = arith.addf %54, %58 : vector<1x128x32xf32>
      %c0_34 = arith.constant 0 : index
      %c0_35 = arith.constant 0 : index
      %c0_36 = arith.constant 0 : index
      %60 = vector.load %arg7[%c0_34, %c0_35, %c0_36] : memref<1x128x32xf32, #tpu.memory_space<vmem>>, vector<1x128x32xf32>
      tpu.vector_store %arg7[%c0_34, %c0_35, %c0_36], %59 {strides = array<i32>} : memref<1x128x32xf32, #tpu.memory_space<vmem>>, vector<1x128x32xf32>,
    } else {
    }
    return
  }
  func.func @transform_0(%arg0: i32, %arg1: i32) -> (i32, i32, i32) {
    %c0_i32 = arith.constant 0 : i32
    %c0_i32_0 = arith.constant 0 : i32
    %c0_i32_1 = arith.constant 0 : i32
    return %arg0, %c0_i32, %c0_i32_0 : i32, i32, i32
  }
  func.func @transform_1(%arg0: i32, %arg1: i32) -> (i32, i32, i32) {
    %c0_i32 = arith.constant 0 : i32
    %c0_i32_0 = arith.constant 0 : i32
    %c0_i32_1 = arith.constant 0 : i32
    return %arg1, %c0_i32, %c0_i32_0 : i32, i32, i32
  }
  func.func @transform_2(%arg0: i32, %arg1: i32) -> (i32, i32, i32) {
    %c0_i32 = arith.constant 0 : i32
    %c0_i32_0 = arith.constant 0 : i32
    %c0_i32_1 = arith.constant 0 : i32
    return %arg1, %c0_i32, %c0_i32_0 : i32, i32, i32
  }
  func.func @transform_3(%arg0: i32, %arg1: i32) -> (i32, i32, i32) {
    %c0_i32 = arith.constant 0 : i32
    %c0_i32_0 = arith.constant 0 : i32
    %c0_i32_1 = arith.constant 0 : i32
    return %arg1, %c0_i32, %c0_i32_0 : i32, i32, i32
  }
  func.func @transform_4(%arg0: i32, %arg1: i32) -> (i32, i32) {
    %c0_i32 = arith.constant 0 : i32
    %c0_i32_0 = arith.constant 0 : i32
    %c0_i32_1 = arith.constant 0 : i32
    return %c0_i32, %c0_i32_0 : i32, i32
  }
  func.func @transform_5(%arg0: i32, %arg1: i32) -> (i32, i32, i32) {
    %c0_i32 = arith.constant 0 : i32
    %c0_i32_0 = arith.constant 0 : i32
    %c0_i32_1 = arith.constant 0 : i32
    return %arg0, %c0_i32, %c0_i32_0 : i32, i32, i32
  }
  func.func @transform_6(%arg0: i32, %arg1: i32) -> (i32, i32, i32, i32) {
    %c0_i32 = arith.constant 0 : i32
    %c0_i32_0 = arith.constant 0 : i32
    %c0_i32_1 = arith.constant 0 : i32
    return %arg0, %arg1, %c0_i32, %c0_i32_0 : i32, i32, i32, i32
  }
}

</mosaic_0001>

<bundles_post_ra>
// kernel: tpu_custom_call.1
= control target key start
LH: loop header
LB: loop body
LE: loop exit
PB: predicated region body
PF: predicated region fallthrough
CT: control target
= control target key end

     0   :  { %12 = vsyncpa [#allocation3], 0  ;;  %s2489_s0 = inlined_call_operand.vmem [shape: bf16[2,128,32], index: 0, kind: input, shape index: {}]   ;;  %s2490_s1 = inlined_call_operand.vmem [shape: bf16[4,32,24], index: 1, kind: input, shape index: {}]   ;;  %s2491_s2 = inlined_call_operand.vmem [shape: f32[4,1,24], index: 2, kind: input, shape index: {}]   ;;  %s2492_s3 = inlined_call_operand.vmem [shape: bf16[4,8,32], index: 3, kind: input, shape index: {}]   ;;  %s2493_s4 = inlined_call_operand.vmem [shape: f32[1,32], index: 4, kind: input, shape index: {}]   ;;  %s2494_s5 = inlined_call_operand.vmem [shape: f32[2,128,32], index: 5, kind: output, shape index: {0}]   ;;  %s2495_s6 = inlined_call_operand.hbm [shape: f32[2,4,128,128], index: 6, kind: output, shape index: {1}]  }
   0x1   :  { %14 = vsyncpa [#allocation3 + $0x1], 0  ;;  %s1944_s21 = smov 0   ;;  %s1946_s22 = smov 0  }
   0x2   :  { %s1948_s23 = smov 0   ;;  %s1950_s24 = smov 0  }
   0x3   :  { %s1952_s25 = smov 0   ;;  %s1954_s26 = smov 0  }
   0x4   :  { %s1956_s27 = smov 0   ;;  %s1958_s28 = smov 0  }
   0x5 LB: > { %2499 = sst [smem:[#allocation5_spill]] %s1897_s27  ;;  %s1435_s29 = sadd.s32 4294967295, %s1901_s28   ;;  %s1901_s28 = sphi %s1958_s28, %s20_s28   ;;  %s1897_s27 = sphi %s1956_s27, %s2506_s27   ;;  %s1893_s26 = sphi %s1954_s26, %s2511_s26   ;;  %s1889_s25 = sphi %s1952_s25, %s2504_s25   ;;  %s1885_s24 = sphi %s1950_s24, %s2510_s24   ;;  %s1881_s23 = sphi %s1948_s23, %s2509_s23   ;;  %s1877_s22 = sphi %s1946_s22, %s2508_s22   ;;  %s1873_s21 = sphi %s1944_s21, %s2507_s21  }
   0x6   : > { %s1436_s30 = sadd.s32 4294967294, %s1901_s28   ;;  %s29_s7 = sadd.s32 1, %s1893_s26 }
   0x7   : > { %p30_p0 = scmp.ge.s32.totalorder %s29_s7, 4  ;;  %s32_s8 = sadd.s32 1, %s1897_s27 }
   0x8   : > { %p202_p1 = scmp.ne.s32.totalorder %s1881_s23, %s1877_s22  ;;  %p203_p2 = scmp.eq.s32.totalorder %s1435_s29, 7 }
   0x9   : > { %s2513_s7 = smov (%p30_p0, %s29_s7), 0  ;;  %s2515_s8 = smov (!%p30_p0, %s32_s8), %s1897_s27 }
   0xa   : > { %2500 = sst [smem:[#allocation6_spill]] %s2513_s7  ;;  %s188_s9 = ssub.s32 %s1893_s26, %s2513_s7 }
   0xb   : > { %p1995_p3 = por %p203_p2, %p202_p1  ;;  %p34_p4 = scmp.ge.s32.totalorder %s2515_s8, 2 }
   0xc   : > { %p208_p5 = scmp.ne.s32.totalorder %s1877_s22, %s1873_s21  ;;  %p209_p6 = scmp.eq.s32.totalorder %s1436_s30, 7 }
   0xd   : > { %p1439_p7 = scmp.ge.s32.totalorder %s1901_s28, 1  ;;  %s2517_s8 = smov (%p34_p4, %s2515_s8), 0 }
   0xe   : > { %2502 = sst [smem:[#allocation7_spill]] %s2517_s8  ;;  %p2004_p8 = por %p209_p6, %p208_p5 }
   0xf   : > { %p259_p9 = scmp.lt.s32.totalorder %s1901_s28, 9  ;;  %s187_s12 = ssub.s32 %s1897_s27, %s2517_s8 }
  0x10   : > { %s192_s13 = sadd.s32 1, %s1881_s23  ;;  %s189_s14 = sor.u32 %s188_s9, %s187_s12 }
  0x11   : > { %p260_p10 = pnand %p1439_p7, %p259_p9  ;;  %p190_p11 = scmp.eq.s32.totalorder %s189_s14, 0 }
  0x12   : > { %p311_p12 = scmp.lt.s32.totalorder (!%p260_p10), %s1885_s24, 3  ;;  %p306_p13 = scmp.lt.s32.totalorder (!%p260_p10), %s1889_s25, 1  ;;  %vm408_vm0 = vcmask (!%p260_p10), 261120   ;;  %vm562_vm1 = vcmask (!%p260_p10), 64512   ;;  %vm1049_vm3 = vcmask (!%p260_p10), 1043456  }
  0x13   : > { %s2013_s15 = scalar_select %p190_p11, %s1881_s23, %s192_s13  }
  0x14   : > { %263 = sbr.rel (%p260_p10) target bundleno = 1548 (0x60c), region = 40  ;;  %s1904_s19 = smov (!%p260_p10), 112  }
  0x15   : > { %s303_s20 = sand.u32 (!%p260_p10), 1, %s1877_s22   ;;  %p1483_p0 = scmp.ne.s32.totalorder (!%p260_p10), %s1885_s24, 0 }
  0x1b   : > { %s2018_s16 = scalar_select %p311_p12, %s1885_s24, 3 }
  0x1c   : > { %s307_s17 = scalar_select %p306_p13, %s1889_s25, 1 }
  0x1d   : > { %s1493_s18 = sshll.u32 %s2018_s16, 4  ;;  %s1445_s9 = sshll.u32 %s2018_s16, 2 }
  0x1e   : > { %s315_s29 = scalar_lea.vmem %s2490_s1, %s1493_s18  ;;  %s1492_s30 = sshll.u32 %s307_s17, 6 }
  0x1f   : > { %v1733_v0 = vld [vmem:[%s315_s29] sm:$0xff]   ;;  %s310_s13 = scalar_lea.vmem %s2489_s0, %s1492_s30  ;;  %s1494_s14 = sshll.u32 %s307_s17, 7  ;;  %v1734_v1 = vld [vmem:[%s315_s29 + $0x8] sm:$0xff]  }
  0x20   : > { %s2031_s27 = scalar_lea.vmem %s2494_s5, %s1494_s14  ;;  %1546 = vmatprep.subr.bf16.mxu0 %v1733_v0  ;;  %v1735_v2 = vld [vmem:[%s310_s13] sm:$0xff]   ;;  %v1736_v3 = vld [vmem:[%s310_s13 + $0x8] sm:$0xff]   ;;  %v1737_v4 = vld [vmem:[%s310_s13 + $0x10] sm:$0xff]   ;;  %s318_s17 = scalar_lea.vmem %s2491_s2, %s2018_s16 }
  0x21   : > { %1547 = vmatpush3.bf16.msra.mxu0 %v1733_v0  ;;  %1550 = vmatprep.mubr.msk.bf16.mxu0 %vm408_vm0, %v1735_v2  ;;  %v1738_v5 = vld [vmem:[%s310_s13 + $0x18] sm:$0xff]   ;;  %v1739_v6 = vld [vmem:[%s310_s13 + $0x20] sm:$0xff]   ;;  %v1740_v7 = vld [vmem:[%s310_s13 + $0x28] sm:$0xff]   ;;  %s1903_s18 = smov 120   ;;  %s1440_s29 = sshll.u32 %s303_s20, 7 }
  0x22   : > { %1548 = vmatprep.subr.bf16.mxu0 %v1734_v1  ;;  %v1741_v8 = vld [vmem:[%s310_s13 + $0x30] sm:$0xff]   ;;  %v1742_v9 = vld [vmem:[%s310_s13 + $0x38] sm:$0xff]   ;;  %v1448_v10 = vld [vmem:[%s318_s17] ss:$0 sm:$0xff]  ;;  %s2234_s30 = scalar_lea.vmem [#allocation2], %s1440_s29  ;;  %s322_s14 = scalar_lea.vmem %s2492_s3, %s1445_s9 }
  0x25   : > { %1549 = vmatpush3.bf16.msra.mxu0 %v1734_v1 }
  0x28   : > { %1551 = vmatmul.mubr.msk.bf16.vlgmr.msra.gmra.mrb[0].mxu0 %vm408_vm0, %v1736_v3 }
  0x29   : > { %1554 = vmatprep.mubr.msk.bf16.mxu0 %vm408_vm0, %v1737_v4  ;;  %v708_v4 = vlaneseq }
  0x30   : > { %1555 = vmatmul.mubr.msk.bf16.gmra.mrb[4].mxu0 %vm408_vm0, %v1738_v5  ;;  %v709_v5 = vand.u32 127, %v708_v4 }
  0x31   : > { %1558 = vmatprep.mubr.msk.bf16.mxu0 %vm408_vm0, %v1739_v6 }
  0x32   : > { %vm710_vm2 = vcmp.lt.s32.totalorder %v709_v5, 8 }
  0x38   : > { %1559 = vmatmul.mubr.msk.bf16.gmra.mrb[8].mxu0 %vm408_vm0, %v1740_v7 }
  0x39   : > { %1562 = vmatprep.mubr.msk.bf16.mxu0 %vm408_vm0, %v1741_v8 }
  0x40   : > { %1563 = vmatmul.mubr.msk.bf16.gmra.mrb[12].mxu0 %vm408_vm0, %v1742_v9 }
  0xfb   : > { %v1552_v11 = vpop.f32.mrb[0].mxu0 }
  0xfc   : > { %v467_v12 = vpop.f32.mrb[1].mxu0  ;;  %v476_v14 = vadd.f32 %v1552_v11, %v1448_v10 }
  0xfd   : > { %v1553_v13 = vpop.f32.mrb[2].mxu0  ;;  %v468_v17 = vadd.f32 %v1448_v10, %v467_v12 }
  0xfe   : > { %v479_v15 = vadd.f32 %v1553_v13, %v1448_v10  ;;  %v470_v16 = vpop.f32.mrb[3].mxu0 }
  0xff   : > { %v471_v18 = vadd.f32 %v1448_v10, %v470_v16 }
 0x100   : > { %v2045_v19 = vpack.c.bf16 %v479_v15, %v476_v14 }
 0x101   : > { %v530_v20 = vpack.c.bf16 %v471_v18, %v468_v17 }
 0x103   : > { %546 = vrot.lane.b32.xlu0 %v530_v20, %s1903_s18  ;;  %1582 = vmatprep.mubr.msk.bf16.mxu1 %vm562_vm1, %v530_v20  ;;  %v1556_v21 = vpop.f32.mrb[4].mxu0 }
 0x104   : > { %v492_v22 = vadd.f32 %v1556_v21, %v1448_v10  ;;  %v483_v23 = vpop.f32.mrb[5].mxu0 }
 0x105   : > { %v484_v24 = vadd.f32 %v1448_v10, %v483_v23  ;;  %v1557_v25 = vpop.f32.mrb[6].mxu0 }
 0x106   : > { %v495_v26 = vadd.f32 %v1557_v25, %v1448_v10  ;;  %v486_v27 = vpop.f32.mrb[7].mxu0 }
 0x107   : > { %v487_v28 = vadd.f32 %v1448_v10, %v486_v27  ;;  %548 = vrot.lane.b32.xlu0 %v2045_v19, %s1903_s18 }
 0x108   : > { %v2051_v29 = vpack.c.bf16 %v495_v26, %v492_v22 }
 0x109   : > { %v2053_v30 = vpack.c.bf16 %v487_v28, %v484_v24 }
 0x10b   : > { %550 = vrot.lane.b32.xlu1 %v2053_v30, %s1903_s18  ;;  %v1560_v31 = vpop.f32.mrb[8].mxu0 }
 0x10c   : > { %v508_v32 = vadd.f32 %v1560_v31, %v1448_v10  ;;  %v499_v33 = vpop.f32.mrb[9].mxu0 }
 0x10d   : > { %v500_v34 = vadd.f32 %v1448_v10, %v499_v33  ;;  %v1561_v35 = vpop.f32.mrb[10].mxu0 }
 0x10e   : > { %v511_v36 = vadd.f32 %v1561_v35, %v1448_v10  ;;  %v502_v37 = vpop.f32.mrb[11].mxu0 }
 0x10f   : > { %552 = vrot.lane.b32.xlu1 %v2051_v29, %s1903_s18  ;;  %v503_v38 = vadd.f32 %v1448_v10, %v502_v37 }
 0x110   : > { %v2059_v39 = vpack.c.bf16 %v511_v36, %v508_v32 }
 0x111   : > { %v2061_v40 = vpack.c.bf16 %v503_v38, %v500_v34 }
 0x113   : > { %v1564_v41 = vpop.f32.mrb[12].mxu0  ;;  %556 = vrot.lane.b32.xlu1 %v2059_v39, %s1903_s18  ;;  %554 = vrot.lane.b32.xlu0 %v2061_v40, %s1903_s18 }
 0x114   : > { %v524_v42 = vadd.f32 %v1564_v41, %v1448_v10  ;;  %v515_v43 = vpop.f32.mrb[13].mxu0 }
 0x115   : > { %v516_v44 = vadd.f32 %v1448_v10, %v515_v43  ;;  %v1565_v45 = vpop.f32.mrb[14].mxu0 }
 0x116   : > { %v527_v46 = vadd.f32 %v1565_v45, %v1448_v10  ;;  %v518_v47 = vpop.f32.mrb[15].mxu0 }
 0x117   : > { %v519_v48 = vadd.f32 %v1448_v10, %v518_v47 }
 0x118   : > { %v2067_v49 = vpack.c.bf16 %v527_v46, %v524_v42 }
 0x119   : > { %v2069_v50 = vpack.c.bf16 %v519_v48, %v516_v44 }
 0x11a   : > { %560 = vrot.lane.b32.xlu1 %v2067_v49, %s1903_s18 }
 0x11b   : > { %558 = vrot.lane.b32.xlu0 %v2069_v50, %s1903_s18 }
 0x11e   : > { %895 = vrot.lane.b32.xlu1 %v530_v20, %s1904_s19 }
 0x175   : > { %v547_v51 = vpop.permute.xlu0 %546 }
 0x176   : > { %1648 = vmatprep.subr.msk.bf16.mxu1 %vm562_vm1, %v547_v51  ;;  %v588_v52 = vsel %vm562_vm1, %v547_v51, 0 }
 0x177   : > { %1567 = vmatpush3.bf16.xpose.msra.mxu1 %v588_v52 }
 0x179   : > { %v549_v53 = vpop.permute.xlu0 %548 }
 0x17a   : > { %1649 = vmatprep.subr.msk.bf16.mxu1 %vm562_vm1, %v549_v53  ;;  %v591_v55 = vsel %vm562_vm1, %v549_v53, 0 }
 0x17d   : > { %v551_v54 = vpop.permute.xlu1 %550 }
 0x17e   : > { %v594_v57 = vsel %vm562_vm1, %v551_v54, 0 }
 0x17f   : > { %1569 = vmatpush3.bf16.xpose.msra.mxu1 %v591_v55 }
 0x180   : > { %1650 = vmatprep.subr.msk.bf16.mxu1 %vm562_vm1, %v551_v54 }
 0x181   : > { %v553_v56 = vpop.permute.xlu1 %552 }
 0x182   : > { %v597_v61 = vsel %vm562_vm1, %v553_v56, 0 }
 0x185   : > { %v557_v58 = vpop.permute.xlu1 %556  ;;  %v555_v60 = vpop.permute.xlu0 %554 }
 0x186   : > { %v600_v63 = vsel %vm562_vm1, %v555_v60, 0  ;;  %v603_v1 = vsel %vm562_vm1, %v557_v58, 0 }
 0x187   : > { %1571 = vmatpush3.bf16.xpose.msra.mxu1 %v594_v57 }
 0x188   : > { %1651 = vmatprep.subr.msk.bf16.mxu1 %vm562_vm1, %v553_v56 }
 0x18c   : > { %v561_v59 = vpop.permute.xlu1 %560 }
 0x18d   : > { %v559_v0 = vpop.permute.xlu0 %558  ;;  %v609_v3 = vsel %vm562_vm1, %v561_v59, 0 }
 0x18e   : > { %v606_v2 = vsel %vm562_vm1, %v559_v0, 0 }
 0x18f   : > { %1573 = vmatpush3.bf16.xpose.msra.mxu1 %v597_v61 }
 0x190   : > { %v896_v62 = vpop.permute.xlu1 %895  ;;  %1652 = vmatprep.subr.msk.bf16.mxu1 %vm562_vm1, %v555_v60 }
 0x191   : > { %1598 = vmatprep.subr.bf16.mxu0 %v896_v62 }
 0x192   : > { %1599 = vmatpush3.bf16.msra.mxu0 %v896_v62 }
 0x197   : > { %1575 = vmatpush3.bf16.xpose.msra.mxu1 %v600_v63 }
 0x198   : > { %1653 = vmatprep.subr.msk.bf16.mxu1 %vm562_vm1, %v557_v58 }
 0x19f   : > { %1577 = vmatpush3.bf16.xpose.msra.mxu1 %v603_v1 }
 0x1a0   : > { %1654 = vmatprep.subr.msk.bf16.mxu1 %vm562_vm1, %v559_v0 }
 0x1a7   : > { %1579 = vmatpush3.bf16.xpose.msra.mxu1 %v606_v2 }
 0x1a8   : > { %1655 = vmatprep.subr.msk.bf16.mxu1 %vm562_vm1, %v561_v59 }
 0x1af   : > { %1581 = vmatpush3.bf16.xpose.msra.mxu1 %v609_v3 }
 0x1b6   : > { %1583 = vmatmul.mubr.msk.bf16.vlgmr.msra.gmra.mrb[0].mxu1 %vm562_vm1, %v2045_v19 }
 0x1b7   : > { %1586 = vmatprep.mubr.msk.bf16.mxu1 %vm562_vm1, %v2053_v30 }
 0x1be   : > { %1587 = vmatmul.mubr.msk.bf16.gmra.mrb[4].mxu1 %vm562_vm1, %v2051_v29 }
 0x1bf   : > { %1590 = vmatprep.mubr.msk.bf16.mxu1 %vm562_vm1, %v2061_v40 }
 0x1c6   : > { %1591 = vmatmul.mubr.msk.bf16.gmra.mrb[8].mxu1 %vm562_vm1, %v2059_v39 }
 0x1c7   : > { %1594 = vmatprep.mubr.msk.bf16.mxu1 %vm562_vm1, %v2069_v50 }
 0x1ce   : > { %1595 = vmatmul.mubr.msk.bf16.gmra.mrb[12].mxu1 %vm562_vm1, %v2067_v49 }
 0x289   : > { %v1584_v6 = vpop.f32.mrb[0].mxu1 }
 0x28a   : > { %v645_v7 = vpop.f32.mrb[1].mxu1  ;;  %v713_v8 = vsel %vm710_vm2, %v1584_v6, -1e+30 }
 0x28b   : > { %731 = vmax.xlane.f32.xlu0 %v713_v8  ;;  %v1585_v9 = vpop.f32.mrb[2].mxu1  ;;  %v711_v12 = vsel %vm710_vm2, %v645_v7, -1e+30 }
 0x28c   : > { %v648_v10 = vpop.f32.mrb[3].mxu1  ;;  %v714_v15 = vsel %vm710_vm2, %v1585_v9, -1e+30 }
 0x28d   : > { %v2108_v11 = vsel %vm710_vm2, %v648_v10, -1e+30 }
 0x28e   : > { %729 = vmax.xlane.f32.xlu1 %v2108_v11 }
 0x28f   : > { %727 = vmax.xlane.f32.xlu0 %v711_v12 }
 0x291   : > { %v1588_v13 = vpop.f32.mrb[4].mxu1 }
 0x292   : > { %v661_v14 = vpop.f32.mrb[5].mxu1  ;;  %v717_v16 = vsel %vm710_vm2, %v1588_v13, -1e+30 }
 0x293   : > { %733 = vmax.xlane.f32.xlu0 %v714_v15  ;;  %739 = vmax.xlane.f32.xlu1 %v717_v16  ;;  %v1589_v17 = vpop.f32.mrb[6].mxu1  ;;  %v715_v20 = vsel %vm710_vm2, %v661_v14, -1e+30 }
 0x294   : > { %v664_v18 = vpop.f32.mrb[7].mxu1  ;;  %v2116_v21 = vsel %vm710_vm2, %v1589_v17, -1e+30 }
 0x295   : > { %v2120_v24 = vsel %vm710_vm2, %v664_v18, -1e+30 }
 0x297   : > { %735 = vmax.xlane.f32.xlu1 %v715_v20  ;;  %741 = vmax.xlane.f32.xlu0 %v2116_v21 }
 0x299   : > { %v1592_v22 = vpop.f32.mrb[8].mxu1 }
 0x29a   : > { %v677_v23 = vpop.f32.mrb[9].mxu1  ;;  %v2123_v25 = vsel %vm710_vm2, %v1592_v22, -1e+30 }
 0x29b   : > { %737 = vmax.xlane.f32.xlu0 %v2120_v24  ;;  %747 = vmax.xlane.f32.xlu1 %v2123_v25  ;;  %v1593_v26 = vpop.f32.mrb[10].mxu1  ;;  %v2128_v28 = vsel %vm710_vm2, %v677_v23, -1e+30 }
 0x29c   : > { %v680_v27 = vpop.f32.mrb[11].mxu1  ;;  %v2131_v31 = vsel %vm710_vm2, %v1593_v26, -1e+30 }
 0x29d   : > { %v2136_v34 = vsel %vm710_vm2, %v680_v27, -1e+30 }
 0x29f   : > { %743 = vmax.xlane.f32.xlu1 %v2128_v28  ;;  %749 = vmax.xlane.f32.xlu0 %v2131_v31 }
 0x2a1   : > { %v1596_v32 = vpop.f32.mrb[12].mxu1 }
 0x2a2   : > { %v693_v33 = vpop.f32.mrb[13].mxu1  ;;  %v2139_v35 = vsel %vm710_vm2, %v1596_v32, -1e+30 }
 0x2a3   : > { %745 = vmax.xlane.f32.xlu0 %v2136_v34  ;;  %755 = vmax.xlane.f32.xlu1 %v2139_v35  ;;  %v1597_v36 = vpop.f32.mrb[14].mxu1  ;;  %v2150_v42 = vsel %vm710_vm2, %v693_v33, -1e+30 }
 0x2a4   : > { %v696_v37 = vpop.f32.mrb[15].mxu1  ;;  %v2144_v38 = vsel %vm710_vm2, %v1597_v36, -1e+30 }
 0x2a5   : > { %v2147_v41 = vsel %vm710_vm2, %v696_v37, -1e+30 }
 0x2a7   : > { %751 = vmax.xlane.f32.xlu1 %v2150_v42 }
 0x2b8   : > { %897 = vrot.lane.b32.xlu1 %v2045_v19, %s1904_s19 }
 0x2b9   : > { %899 = vrot.lane.b32.xlu0 %v2053_v30, %s1904_s19 }
 0x2bc   : > { %901 = vrot.lane.b32.xlu1 %v2051_v29, %s1904_s19 }
 0x2bd   : > { %903 = vrot.lane.b32.xlu0 %v2061_v40, %s1904_s19 }
 0x2c0   : > { %907 = vrot.lane.b32.xlu1 %v2069_v50, %s1904_s19 }
 0x2dc   : > { %757 = vmax.xlane.f32.xlu0 %v2144_v38 }
 0x2e0   : > { %753 = vmax.xlane.f32.xlu0 %v2147_v41 }
 0x2f6   : > { %905 = vrot.lane.b32.xlu0 %v2059_v39, %s1904_s19 }
 0x318   : > { %v732_v19 = vpop.xlane.xlu0 %731 }
 0x319   : > { %v761_v43 = vsub.f32 %v713_v8, %v732_v19 }
 0x31b   : > { %v779_v44 = vmul.f32 1.442695, %v761_v43  ;;  %v730_v30 = vpop.xlane.xlu1 %729 }
 0x31c   : > { %v728_v45 = vpop.xlane.xlu0 %727  ;;  %v760_v40 = vsub.f32 %v2108_v11, %v730_v30 }
 0x31d   : > { %1743 = vpow2.f32 %v779_v44  ;;  %v759_v29 = vsub.f32 %v711_v12, %v728_v45 }
 0x31e   : > { %v777_v54 = vmul.f32 1.442695, %v760_v40 }
 0x31f   : > { %v775_v46 = vmul.f32 1.442695, %v759_v29 }
 0x320   : > { %v734_v47 = vpop.xlane.xlu0 %733  ;;  %v740_v48 = vpop.xlane.xlu1 %739 }
 0x321   : > { %1745 = vpow2.f32 %v775_v46  ;;  %v762_v50 = vsub.f32 %v714_v15, %v734_v47  ;;  %v765_v51 = vsub.f32 %v717_v16, %v740_v48 }
 0x323   : > { %v781_v52 = vmul.f32 1.442695, %v762_v50  ;;  %v787_v53 = vmul.f32 1.442695, %v765_v51 }
 0x324   : > { %v736_v55 = vpop.xlane.xlu1 %735  ;;  %v742_v39 = vpop.xlane.xlu0 %741 }
 0x325   : > { %1747 = vpow2.f32 %v781_v52  ;;  %v763_v56 = vsub.f32 %v715_v20, %v736_v55  ;;  %v766_v57 = vsub.f32 %v2116_v21, %v742_v39 }
 0x326   : > { %1749 = vpow2.f32 %v787_v53 }
 0x327   : > { %v2169_v58 = vpop.eup %1743  ;;  %v783_v59 = vmul.f32 1.442695, %v763_v56  ;;  %1751 = vpow2.f32 %v777_v54  ;;  %v789_v63 = vmul.f32 1.442695, %v766_v57 }
 0x328   : > { %v738_v60 = vpop.xlane.xlu0 %737  ;;  %v748_v61 = vpop.xlane.xlu1 %747  ;;  %811 = vadd.xlane.f32.xlu0 %v2169_v58 }
 0x329   : > { %1753 = vpow2.f32 %v783_v59  ;;  %v764_v62 = vsub.f32 %v2120_v24, %v738_v60  ;;  %v769_v0 = vsub.f32 %v2123_v25, %v748_v61 }
 0x32b   : > { %v2174_v1 = vpop.eup %1745  ;;  %v785_v2 = vmul.f32 1.442695, %v764_v62  ;;  %v795_v5 = vmul.f32 1.442695, %v769_v0 }
 0x32c   : > { %v744_v3 = vpop.xlane.xlu1 %743  ;;  %v750_v4 = vpop.xlane.xlu0 %749  ;;  %807 = vadd.xlane.f32.xlu0 %v2174_v1 }
 0x32d   : > { %1755 = vpow2.f32 %v785_v2  ;;  %v767_v6 = vsub.f32 %v2128_v28, %v744_v3  ;;  %v770_v15 = vsub.f32 %v2131_v31, %v750_v4 }
 0x32e   : > { %1757 = vpow2.f32 %v789_v63 }
 0x32f   : > { %v2178_v7 = vpop.eup %1747  ;;  %1759 = vpow2.f32 %v795_v5  ;;  %v791_v14 = vmul.f32 1.442695, %v767_v6  ;;  %v797_v21 = vmul.f32 1.442695, %v770_v15 }
 0x330   : > { %v2180_v8 = vpop.eup %1749  ;;  %v746_v9 = vpop.xlane.xlu0 %745  ;;  %813 = vadd.xlane.f32.xlu0 %v2178_v7 }
 0x331   : > { %v756_v10 = vpop.xlane.xlu1 %755  ;;  %v768_v11 = vsub.f32 %v2136_v34, %v746_v9  ;;  %819 = vadd.xlane.f32.xlu1 %v2180_v8  ;;  %v2186_v13 = vpop.eup %1751 }
 0x332   : > { %v773_v12 = vsub.f32 %v2139_v35, %v756_v10 }
 0x333   : > { %v2189_v16 = vpop.eup %1753  ;;  %v793_v17 = vmul.f32 1.442695, %v768_v11 }
 0x334   : > { %809 = vadd.xlane.f32.xlu0 %v2186_v13  ;;  %v803_v20 = vmul.f32 1.442695, %v773_v12  ;;  %v900_v26 = vpop.permute.xlu0 %899 }
 0x335   : > { %v752_v18 = vpop.xlane.xlu1 %751  ;;  %1761 = vpow2.f32 %v793_v17  ;;  %815 = vadd.xlane.f32.xlu1 %v2189_v16 }
 0x336   : > { %1763 = vpow2.f32 %v791_v14  ;;  %v771_v22 = vsub.f32 %v2150_v42, %v752_v18 }
 0x337   : > { %v2194_v23 = vpop.eup %1755  ;;  %1765 = vpow2.f32 %v803_v20 }
 0x338   : > { %v2196_v24 = vpop.eup %1757  ;;  %817 = vadd.xlane.f32.xlu0 %v2194_v23  ;;  %1767 = vpow2.f32 %v797_v21  ;;  %v799_v27 = vmul.f32 1.442695, %v771_v22  ;;  %v904_v34 = vpop.permute.xlu0 %903 }
 0x339   : > { %v898_v25 = vpop.permute.xlu1 %897  ;;  %821 = vadd.xlane.f32.xlu1 %v2196_v24  ;;  %v2200_v28 = vpop.eup %1759 }
 0x33a   : > { %1600 = vmatprep.subr.bf16.mxu0 %v898_v25  ;;  %1769 = vpow2.f32 %v799_v27 }
 0x33b   : > { %1601 = vmatpush3.bf16.msra.mxu0 %v898_v25 }
 0x33c   : > { %1602 = vmatprep.subr.bf16.mxu0 %v900_v26 }
 0x33d   : > { %827 = vadd.xlane.f32.xlu1 %v2200_v28  ;;  %v902_v31 = vpop.permute.xlu1 %901 }
 0x33f   : > { %1603 = vmatpush3.bf16.msra.mxu0 %v900_v26  ;;  %v2203_v32 = vpop.eup %1761 }
 0x340   : > { %1604 = vmatprep.subr.bf16.mxu0 %v902_v31  ;;  %v2205_v33 = vpop.eup %1763  ;;  %825 = vadd.xlane.f32.xlu0 %v2203_v32 }
 0x341   : > { %823 = vadd.xlane.f32.xlu1 %v2205_v33  ;;  %v2209_v35 = vpop.eup %1765  ;;  %v908_v46 = vpop.permute.xlu1 %907 }
 0x342   : > { %v2211_v36 = vpop.eup %1767 }
 0x343   : > { %1605 = vmatpush3.bf16.msra.mxu0 %v902_v31 }
 0x344   : > { %1606 = vmatprep.subr.bf16.mxu0 %v904_v34  ;;  %835 = vadd.xlane.f32.xlu0 %v2209_v35  ;;  %v2215_v37 = vpop.eup %1769 }
 0x345   : > { %829 = vadd.xlane.f32.xlu1 %v2211_v36 }
 0x347   : > { %1607 = vmatpush3.bf16.msra.mxu0 %v904_v34  ;;  %v1024_v34 = vld [vmem:[%s322_s14] sm:$0xf] }
 0x349   : > { %831 = vadd.xlane.f32.xlu1 %v2215_v37 }
 0x369   : > { %v758_v42 = vpop.xlane.xlu0 %757 }
 0x36a   : > { %v774_v19 = vsub.f32 %v2144_v38, %v758_v42 }
 0x36c   : > { %v805_v43 = vmul.f32 1.442695, %v774_v19 }
 0x36d   : > { %v754_v44 = vpop.xlane.xlu0 %753 }
 0x36e   : > { %1771 = vpow2.f32 %v805_v43  ;;  %v772_v30 = vsub.f32 %v2147_v41, %v754_v44 }
 0x370   : > { %v801_v45 = vmul.f32 1.442695, %v772_v30 }
 0x371   : > { %v906_v29 = vpop.permute.xlu0 %905 }
 0x372   : > { %1773 = vpow2.f32 %v801_v45  ;;  %1608 = vmatprep.subr.bf16.mxu0 %v906_v29 }
 0x373   : > { %1609 = vmatpush3.bf16.msra.mxu0 %v906_v29 }
 0x374   : > { %1610 = vmatprep.subr.bf16.mxu0 %v908_v46 }
 0x377   : > { %1611 = vmatpush3.bf16.msra.mxu0 %v908_v46 }
 0x378   : > { %v2220_v40 = vpop.eup %1771 }
 0x379   : > { %837 = vadd.xlane.f32.xlu1 %v2220_v40 }
 0x37c   : > { %v2223_v38 = vpop.eup %1773 }
 0x37d   : > { %833 = vadd.xlane.f32.xlu0 %v2223_v38 }
 0x393   : > { %909 = vrot.lane.b32.xlu0 %v2067_v49, %s1904_s19 }
 0x3b5   : > { %v812_v41 = vpop.xlane.xlu0 %811 }
 0x3b6   : > { %1775 = vrcp.f32 %v812_v41 }
 0x3b9   : > { %v808_v47 = vpop.xlane.xlu0 %807 }
 0x3ba   : > { %1777 = vrcp.f32 %v808_v47 }
 0x3bd   : > { %v814_v48 = vpop.xlane.xlu0 %813 }
 0x3be   : > { %v820_v50 = vpop.xlane.xlu1 %819  ;;  %1779 = vrcp.f32 %v814_v48 }
 0x3bf   : > { %1781 = vrcp.f32 %v820_v50 }
 0x3c0   : > { %v1776_v51 = vpop.eup %1775 }
 0x3c1   : > { %v2232_v52 = vmul.f32 %v1776_v51, %v2169_v58  ;;  %v810_v53 = vpop.xlane.xlu0 %809 }
 0x3c2   : > { %v816_v54 = vpop.xlane.xlu1 %815  ;;  %1783 = vrcp.f32 %v810_v53 }
 0x3c3   : > { %873 = vst [vmem:[%s2234_s30 + $0x10] sm:$0xff] %v2232_v52  ;;  %1785 = vrcp.f32 %v816_v54 }
 0x3c4   : > { %v1778_v49 = vpop.eup %1777 }
 0x3c5   : > { %v818_v55 = vpop.xlane.xlu0 %817  ;;  %v855_v39 = vmul.f32 %v1778_v49, %v2174_v1 }
 0x3c6   : > { %v822_v56 = vpop.xlane.xlu1 %821  ;;  %1787 = vrcp.f32 %v818_v55 }
 0x3c7   : > { %1789 = vrcp.f32 %v822_v56  ;;  %871 = vst [vmem:[%s2234_s30] sm:$0xff] %v855_v39 }
 0x3c8   : > { %v1780_v57 = vpop.eup %1779 }
 0x3c9   : > { %v1782_v58 = vpop.eup %1781  ;;  %v2241_v59 = vmul.f32 %v1780_v57, %v2178_v7 }
 0x3ca   : > { %v828_v60 = vpop.xlane.xlu1 %827  ;;  %v2244_v61 = vmul.f32 %v1782_v58, %v2180_v8 }
 0x3cb   : > { %874 = vst [vmem:[%s2234_s30 + $0x18] sm:$0xff] %v2241_v59  ;;  %1791 = vrcp.f32 %v828_v60  ;;  %v888_v62 = vpack.c.bf16 %v2241_v59, %v2232_v52 }
 0x3cc   : > { %v1784_v63 = vpop.eup %1783  ;;  %877 = vst [vmem:[%s2234_s30 + $0x30] sm:$0xff] %v2244_v61 }
 0x3cd   : > { %v1786_v0 = vpop.eup %1785  ;;  %v826_v1 = vpop.xlane.xlu0 %825  ;;  %v856_v2 = vmul.f32 %v1784_v63, %v2186_v13 }
 0x3ce   : > { %v824_v3 = vpop.xlane.xlu1 %823  ;;  %1793 = vrcp.f32 %v826_v1  ;;  %v859_v4 = vmul.f32 %v1786_v0, %v2189_v16 }
 0x3cf   : > { %1795 = vrcp.f32 %v824_v3  ;;  %872 = vst [vmem:[%s2234_s30 + $0x8] sm:$0xff] %v856_v2  ;;  %v887_v5 = vpack.c.bf16 %v856_v2, %v855_v39 }
 0x3d0   : > { %v1788_v6 = vpop.eup %1787  ;;  %875 = vst [vmem:[%s2234_s30 + $0x20] sm:$0xff] %v859_v4 }
 0x3d1   : > { %v1790_v7 = vpop.eup %1789  ;;  %1614 = vmatprep.mubr.bf16.mxu0 %v887_v5  ;;  %v836_v8 = vpop.xlane.xlu0 %835  ;;  %v860_v9 = vmul.f32 %v1788_v6, %v2194_v23 }
 0x3d2   : > { %v830_v10 = vpop.xlane.xlu1 %829  ;;  %1797 = vrcp.f32 %v836_v8  ;;  %v862_v11 = vmul.f32 %v1790_v7, %v2196_v24 }
 0x3d3   : > { %1799 = vrcp.f32 %v830_v10  ;;  %876 = vst [vmem:[%s2234_s30 + $0x28] sm:$0xff] %v860_v9  ;;  %v889_v12 = vpack.c.bf16 %v860_v9, %v859_v4 }
 0x3d4   : > { %878 = vst [vmem:[%s2234_s30 + $0x38] sm:$0xff] %v862_v11  ;;  %v890_v13 = vpack.c.bf16 %v862_v11, %v2244_v61 }
 0x3d5   : > { %v1792_v14 = vpop.eup %1791 }
 0x3d6   : > { %v832_v15 = vpop.xlane.xlu1 %831  ;;  %v865_v16 = vmul.f32 %v1792_v14, %v2200_v28 }
 0x3d7   : > { %1801 = vrcp.f32 %v832_v15 }
 0x3d8   : > { %v1794_v17 = vpop.eup %1793  ;;  %881 = vst [vmem:[%s2234_s30 + $0x50] sm:$0xff] %v865_v16 }
 0x3d9   : > { %v1796_v18 = vpop.eup %1795  ;;  %v864_v20 = vmul.f32 %v1794_v17, %v2203_v32 }
 0x3da   : > { %v863_v21 = vmul.f32 %v1796_v18, %v2205_v33 }
 0x3db   : > { %880 = vst [vmem:[%s2234_s30 + $0x48] sm:$0xff] %v864_v20 }
 0x3dc   : > { %v1798_v22 = vpop.eup %1797  ;;  %879 = vst [vmem:[%s2234_s30 + $0x40] sm:$0xff] %v863_v21  ;;  %v891_v43 = vpack.c.bf16 %v864_v20, %v863_v21 }
 0x3dd   : > { %v1800_v23 = vpop.eup %1799  ;;  %v869_v24 = vmul.f32 %v1798_v22, %v2209_v35 }
 0x3de   : > { %v866_v25 = vmul.f32 %v1800_v23, %v2211_v36  ;;  %v1051_v36 = vsel %vm1049_vm3, %v1024_v34, 0 }
 0x3df   : > { %885 = vst [vmem:[%s2234_s30 + $0x70] sm:$0xff] %v869_v24 }
 0x3e0   : > { %882 = vst [vmem:[%s2234_s30 + $0x58] sm:$0xff] %v866_v25  ;;  %v892_v26 = vpack.c.bf16 %v866_v25, %v865_v16  ;;  %v1905_v16 = vmov (!%p1483_p0), 0.0  }
 0x3e1   : > { %v1802_v27 = vpop.eup %1801  ;;  %1154 = vst.msk [vmem:[%s2031_s27] sm:$0xff] (!%p1483_p0), %vm408_vm0, %v1905_v16  ;;  %1155 = vst.msk [vmem:[%s2031_s27 + $0x8] sm:$0xff] (!%p1483_p0), %vm408_vm0, %v1905_v16 }
 0x3e2   : > { %v867_v28 = vmul.f32 %v1802_v27, %v2215_v37  ;;  %1156 = vst.msk [vmem:[%s2031_s27 + $0x10] sm:$0xff] (!%p1483_p0), %vm408_vm0, %v1905_v16  ;;  %1157 = vst.msk [vmem:[%s2031_s27 + $0x18] sm:$0xff] (!%p1483_p0), %vm408_vm0, %v1905_v16 }
 0x3e3   : > { %1158 = vst.msk [vmem:[%s2031_s27 + $0x20] sm:$0xff] (!%p1483_p0), %vm408_vm0, %v1905_v16  ;;  %1159 = vst.msk [vmem:[%s2031_s27 + $0x28] sm:$0xff] (!%p1483_p0), %vm408_vm0, %v1905_v16 }
 0x3e4   : > { %883 = vst [vmem:[%s2234_s30 + $0x60] sm:$0xff] %v867_v28  ;;  %1160 = vst.msk [vmem:[%s2031_s27 + $0x30] sm:$0xff] (!%p1483_p0), %vm408_vm0, %v1905_v16 }
 0x3e5   : > { %1161 = vst.msk [vmem:[%s2031_s27 + $0x38] sm:$0xff] (!%p1483_p0), %vm408_vm0, %v1905_v16  ;;  %1162 = vst.msk [vmem:[%s2031_s27 + $0x40] sm:$0xff] (!%p1483_p0), %vm408_vm0, %v1905_v16 }
 0x3e6   : > { %1163 = vst.msk [vmem:[%s2031_s27 + $0x48] sm:$0xff] (!%p1483_p0), %vm408_vm0, %v1905_v16  ;;  %1164 = vst.msk [vmem:[%s2031_s27 + $0x50] sm:$0xff] (!%p1483_p0), %vm408_vm0, %v1905_v16 }
 0x3e7   : > { %1165 = vst.msk [vmem:[%s2031_s27 + $0x58] sm:$0xff] (!%p1483_p0), %vm408_vm0, %v1905_v16  ;;  %1166 = vst.msk [vmem:[%s2031_s27 + $0x60] sm:$0xff] (!%p1483_p0), %vm408_vm0, %v1905_v16 }
 0x3e8   : > { %1167 = vst.msk [vmem:[%s2031_s27 + $0x68] sm:$0xff] (!%p1483_p0), %vm408_vm0, %v1905_v16  ;;  %1168 = vst.msk [vmem:[%s2031_s27 + $0x70] sm:$0xff] (!%p1483_p0), %vm408_vm0, %v1905_v16 }
 0x3e9   : > { %1169 = vst.msk [vmem:[%s2031_s27 + $0x78] sm:$0xff] (!%p1483_p0), %vm408_vm0, %v1905_v16 }
 0x406   : > { %v838_v31 = vpop.xlane.xlu1 %837 }
 0x407   : > { %1803 = vrcp.f32 %v838_v31 }
 0x40a   : > { %v834_v32 = vpop.xlane.xlu0 %833 }
 0x40b   : > { %1805 = vrcp.f32 %v834_v32 }
 0x40e   : > { %v910_v33 = vpop.permute.xlu0 %909 }
 0x40f   : > { %1612 = vmatprep.subr.bf16.mxu0 %v910_v33 }
 0x410   : > { %1613 = vmatpush3.bf16.msra.mxu0 %v910_v33 }
 0x411   : > { %v1804_v35 = vpop.eup %1803  ;;  %1656 = vmatprep.subr.msk.bf16.mxu0 %vm1049_vm3, %v1024_v34 }
 0x412   : > { %v870_v37 = vmul.f32 %v1804_v35, %v2220_v40 }
 0x413   : > { %1615 = vmatmul.mubr.bf16.vlgmr.msra.gmra.mrb[16].mxu0 %v888_v62 }
 0x414   : > { %1618 = vmatprep.mubr.bf16.mxu0 %v889_v12  ;;  %886 = vst [vmem:[%s2234_s30 + $0x78] sm:$0xff] %v870_v37  ;;  %1631 = vmatpush3.bf16.msra.mxu0 %v1051_v36  ;;  %v894_v30 = vpack.c.bf16 %v870_v37, %v869_v24 }
 0x415   : > { %v1806_v42 = vpop.eup %1805 }
 0x416   : > { %v868_v19 = vmul.f32 %v1806_v42, %v2223_v38 }
 0x418   : > { %884 = vst [vmem:[%s2234_s30 + $0x68] sm:$0xff] %v868_v19  ;;  %v893_v44 = vpack.c.bf16 %v868_v19, %v867_v28 }
 0x41b   : > { %1619 = vmatmul.mubr.bf16.gmra.mrb[20].mxu0 %v890_v13 }
 0x41c   : > { %1622 = vmatprep.mubr.bf16.mxu0 %v891_v43 }
 0x423   : > { %1623 = vmatmul.mubr.bf16.gmra.mrb[24].mxu0 %v892_v26 }
 0x424   : > { %1626 = vmatprep.mubr.bf16.mxu0 %v893_v44 }
 0x42b   : > { %1627 = vmatmul.mubr.bf16.gmra.mrb[28].mxu0 %v894_v30 }
 0x4e6   : > { %v1616_v45 = vpop.f32.mrb[16].mxu0 }
 0x4e7   : > { %v953_v29 = vpop.f32.mrb[17].mxu0 }
 0x4e8   : > { %v1617_v46 = vpop.f32.mrb[18].mxu0 }
 0x4e9   : > { %v1017_v40 = vpack.c.bf16 %v1617_v46, %v1616_v45  ;;  %v956_v41 = vpop.f32.mrb[19].mxu0 }
 0x4ea   : > { %v1016_v47 = vpack.c.bf16 %v956_v41, %v953_v29 }
 0x4ec   : > { %1632 = vmatprep.mubr.msk.bf16.mxu0 %vm562_vm1, %v1016_v47 }
 0x4ed   : > { %1633 = vmatmul.mubr.msk.bf16.vlgmr.msra.gmra.mrb[32].mxu0 %vm562_vm1, %v1017_v40 }
 0x4ee   : > { %v1620_v38 = vpop.f32.mrb[20].mxu0 }
 0x4ef   : > { %v969_v48 = vpop.f32.mrb[21].mxu0 }
 0x4f0   : > { %v1621_v50 = vpop.f32.mrb[22].mxu0 }
 0x4f1   : > { %v1019_v51 = vpack.c.bf16 %v1621_v50, %v1620_v38  ;;  %v972_v52 = vpop.f32.mrb[23].mxu0 }
 0x4f2   : > { %v1018_v53 = vpack.c.bf16 %v972_v52, %v969_v48 }
 0x4f4   : > { %1636 = vmatprep.mubr.msk.bf16.mxu0 %vm562_vm1, %v1018_v53 }
 0x4f5   : > { %1637 = vmatmul.mubr.msk.bf16.gmra.mrb[36].mxu0 %vm562_vm1, %v1019_v51 }
 0x4f6   : > { %v1624_v54 = vpop.f32.mrb[24].mxu0 }
 0x4f7   : > { %v985_v49 = vpop.f32.mrb[25].mxu0 }
 0x4f8   : > { %v1625_v55 = vpop.f32.mrb[26].mxu0 }
 0x4f9   : > { %v1021_v39 = vpack.c.bf16 %v1625_v55, %v1624_v54  ;;  %v988_v56 = vpop.f32.mrb[27].mxu0 }
 0x4fa   : > { %v1020_v57 = vpack.c.bf16 %v988_v56, %v985_v49 }
 0x4fc   : > { %1640 = vmatprep.mubr.msk.bf16.mxu0 %vm562_vm1, %v1020_v57 }
 0x4fd   : > { %1641 = vmatmul.mubr.msk.bf16.gmra.mrb[40].mxu0 %vm562_vm1, %v1021_v39 }
 0x4fe   : > { %v1628_v58 = vpop.f32.mrb[28].mxu0 }
 0x4ff   : > { %v1001_v59 = vpop.f32.mrb[29].mxu0 }
 0x500   : > { %v1629_v60 = vpop.f32.mrb[30].mxu0 }
 0x501   : > { %v1023_v61 = vpack.c.bf16 %v1629_v60, %v1628_v58  ;;  %v1004_v62 = vpop.f32.mrb[31].mxu0 }
 0x502   : > { %v1022_v63 = vpack.c.bf16 %v1004_v62, %v1001_v59 }
 0x504   : > { %1644 = vmatprep.mubr.msk.bf16.mxu0 %vm562_vm1, %v1022_v63 }
 0x505   : > { %1645 = vmatmul.mubr.msk.bf16.gmra.mrb[44].mxu0 %vm562_vm1, %v1023_v61 }
 0x5c0   : > { %v1634_v0 = vpop.f32.mrb[32].mxu0 }
 0x5c1   : > { %v1087_v1 = vpop.f32.mrb[33].mxu0 }
 0x5c2   : > { %v1635_v2 = vpop.f32.mrb[34].mxu0 }
 0x5c3   : > { %v1090_v3 = vpop.f32.mrb[35].mxu0 }
 0x5c8   : > { %v1638_v4 = vpop.f32.mrb[36].mxu0 }
 0x5c9   : > { %v1103_v5 = vpop.f32.mrb[37].mxu0 }
 0x5ca   : > { %v1639_v6 = vpop.f32.mrb[38].mxu0 }
 0x5cb   : > { %v1106_v7 = vpop.f32.mrb[39].mxu0 }
 0x5d0   : > { %v1642_v8 = vpop.f32.mrb[40].mxu0 }
 0x5d1   : > { %v1119_v9 = vpop.f32.mrb[41].mxu0 }
 0x5d2   : > { %v1643_v10 = vpop.f32.mrb[42].mxu0 }
 0x5d3   : > { %v1122_v11 = vpop.f32.mrb[43].mxu0 }
 0x5d5   : > { %1153 = sbr.rel (%p1483_p0) target bundleno = 1500 (0x5dc), region = 44 }
 0x5d8   : > { %v1646_v12 = vpop.f32.mrb[44].mxu0 }
 0x5d9   : > { %v1135_v13 = vpop.f32.mrb[45].mxu0 }
 0x5da   : > { %v2289_v14 = vpop.f32.mrb[46].mxu0 }
 0x5db   : > { %v1138_v15 = vpop.f32.mrb[47].mxu0 }
 0x5dc PF: > { %v1170_v17 = vld [vmem:[%s2031_s27] sm:$0xff]  ;;  %v1171_v18 = vld [vmem:[%s2031_s27 + $0x8] sm:$0xff]  ;;  %v1172_v20 = vld [vmem:[%s2031_s27 + $0x10] sm:$0xff]  ;;  %p1484_p1 = scmp.ne.s32.totalorder %s1885_s24, 3 }
 0x5dd   : > { %v1186_v21 = vadd.f32 %v1170_v17, %v1087_v1  ;;  %v1187_v22 = vadd.f32 %v1171_v18, %v1090_v3  ;;  %v1188_v23 = vadd.f32 %v1634_v0, %v1172_v20  ;;  %v1173_v24 = vld [vmem:[%s2031_s27 + $0x18] sm:$0xff]  ;;  %v1174_v25 = vld [vmem:[%s2031_s27 + $0x20] sm:$0xff]  ;;  %v1175_v26 = vld [vmem:[%s2031_s27 + $0x28] sm:$0xff] }
 0x5de   : > { %v1189_v27 = vadd.f32 %v1635_v2, %v1173_v24  ;;  %v1190_v28 = vadd.f32 %v1174_v25, %v1103_v5  ;;  %v1191_v31 = vadd.f32 %v1175_v26, %v1106_v7  ;;  %v1176_v32 = vld [vmem:[%s2031_s27 + $0x30] sm:$0xff]  ;;  %v1177_v33 = vld [vmem:[%s2031_s27 + $0x38] sm:$0xff]  ;;  %v1178_v34 = vld [vmem:[%s2031_s27 + $0x40] sm:$0xff] }
 0x5df   : > { %1202 = vst.msk [vmem:[%s2031_s27] sm:$0xff] %vm408_vm0, %v1186_v21  ;;  %1203 = vst.msk [vmem:[%s2031_s27 + $0x8] sm:$0xff] %vm408_vm0, %v1187_v22  ;;  %v1192_v35 = vadd.f32 %v1638_v4, %v1176_v32  ;;  %v1193_v36 = vadd.f32 %v1639_v6, %v1177_v33  ;;  %v1194_v37 = vadd.f32 %v1178_v34, %v1119_v9  ;;  %v1179_v42 = vld [vmem:[%s2031_s27 + $0x48] sm:$0xff]  ;;  %v1180_v19 = vld [vmem:[%s2031_s27 + $0x50] sm:$0xff] }
 0x5e0   : > { %1204 = vst.msk [vmem:[%s2031_s27 + $0x10] sm:$0xff] %vm408_vm0, %v1188_v23  ;;  %v1181_v43 = vld [vmem:[%s2031_s27 + $0x58] sm:$0xff]  ;;  %1205 = vst.msk [vmem:[%s2031_s27 + $0x18] sm:$0xff] %vm408_vm0, %v1189_v27  ;;  %v1195_v44 = vadd.f32 %v1179_v42, %v1122_v11  ;;  %v1196_v30 = vadd.f32 %v1642_v8, %v1180_v19  ;;  %v1182_v29 = vld [vmem:[%s2031_s27 + $0x60] sm:$0xff]  ;;  %1221 = sbr.rel (%p1484_p1) target bundleno = 1521 (0x5f1), region = 48 }
 0x5e1   : > { %1206 = vst.msk [vmem:[%s2031_s27 + $0x20] sm:$0xff] %vm408_vm0, %v1190_v28  ;;  %1207 = vst.msk [vmem:[%s2031_s27 + $0x28] sm:$0xff] %vm408_vm0, %v1191_v31  ;;  %v1197_v45 = vadd.f32 %v1643_v10, %v1181_v43  ;;  %v1183_v46 = vld [vmem:[%s2031_s27 + $0x68] sm:$0xff]  ;;  %v1184_v40 = vld [vmem:[%s2031_s27 + $0x70] sm:$0xff]  ;;  %v1198_v41 = vadd.f32 %v1182_v29, %v1135_v13 }
 0x5e2   : > { %1208 = vst.msk [vmem:[%s2031_s27 + $0x30] sm:$0xff] %vm408_vm0, %v1192_v35  ;;  %1209 = vst.msk [vmem:[%s2031_s27 + $0x38] sm:$0xff] %vm408_vm0, %v1193_v36  ;;  %v1199_v47 = vadd.f32 %v1183_v46, %v1138_v15  ;;  %v1200_v38 = vadd.f32 %v1646_v12, %v1184_v40  ;;  %v1185_v48 = vld [vmem:[%s2031_s27 + $0x78] sm:$0xff]  ;;  %v1485_v52 = vld [vmem:[%s2493_s4] ss:$0 sm:$0xff] (!%p1484_p1) }
 0x5e3   : > { %1210 = vst.msk [vmem:[%s2031_s27 + $0x40] sm:$0xff] %vm408_vm0, %v1194_v37  ;;  %1211 = vst.msk [vmem:[%s2031_s27 + $0x48] sm:$0xff] %vm408_vm0, %v1195_v44  ;;  %v1201_v50 = vadd.f32 %v2289_v14, %v1185_v48 }
 0x5e4   : > { %1212 = vst.msk [vmem:[%s2031_s27 + $0x50] sm:$0xff] %vm408_vm0, %v1196_v30  ;;  %1213 = vst.msk [vmem:[%s2031_s27 + $0x58] sm:$0xff] %vm408_vm0, %v1197_v45 }
 0x5e5   : > { %1214 = vst.msk [vmem:[%s2031_s27 + $0x60] sm:$0xff] %vm408_vm0, %v1198_v41  ;;  %1215 = vst.msk [vmem:[%s2031_s27 + $0x68] sm:$0xff] %vm408_vm0, %v1199_v47 }
 0x5e6   : > { %1216 = vst.msk [vmem:[%s2031_s27 + $0x70] sm:$0xff] %vm408_vm0, %v1200_v38  ;;  %1217 = vst.msk [vmem:[%s2031_s27 + $0x78] sm:$0xff] %vm408_vm0, %v1201_v50  ;;  %v1222_v51 = vld [vmem:[%s2031_s27] sm:$0xff] (!%p1484_p1)  ;;  %v1223_v53 = vld [vmem:[%s2031_s27 + $0x8] sm:$0xff] (!%p1484_p1) }
 0x5e7   : > { %v1245_v54 = vadd.f32 %v1485_v52, %v1222_v51  ;;  %v1246_v49 = vadd.f32 %v1485_v52, %v1223_v53  ;;  %v1224_v55 = vld [vmem:[%s2031_s27 + $0x10] sm:$0xff]  ;;  %v1225_v39 = vld [vmem:[%s2031_s27 + $0x18] sm:$0xff] }
 0x5e8   : > { %v1226_v56 = vld [vmem:[%s2031_s27 + $0x20] sm:$0xff]  ;;  %v1247_v57 = vadd.f32 %v1485_v52, %v1224_v55  ;;  %v1248_v58 = vadd.f32 %v1485_v52, %v1225_v39  ;;  %v1227_v60 = vld [vmem:[%s2031_s27 + $0x28] sm:$0xff] }
 0x5e9   : > { %v1249_v59 = vadd.f32 %v1485_v52, %v1226_v56  ;;  %v1228_v61 = vld [vmem:[%s2031_s27 + $0x30] sm:$0xff]  ;;  %v1229_v62 = vld [vmem:[%s2031_s27 + $0x38] sm:$0xff]  ;;  %1261 = vst.msk [vmem:[%s2031_s27] sm:$0xff] %vm408_vm0, %v1245_v54  ;;  %1262 = vst.msk [vmem:[%s2031_s27 + $0x8] sm:$0xff] %vm408_vm0, %v1246_v49  ;;  %v1250_v63 = vadd.f32 %v1485_v52, %v1227_v60 }
 0x5ea   : > { %v1251_v0 = vadd.f32 %v1485_v52, %v1228_v61  ;;  %v1252_v1 = vadd.f32 %v1485_v52, %v1229_v62  ;;  %v1230_v2 = vld [vmem:[%s2031_s27 + $0x40] sm:$0xff]  ;;  %v1231_v3 = vld [vmem:[%s2031_s27 + $0x48] sm:$0xff]  ;;  %1263 = vst.msk [vmem:[%s2031_s27 + $0x10] sm:$0xff] %vm408_vm0, %v1247_v57  ;;  %1264 = vst.msk [vmem:[%s2031_s27 + $0x18] sm:$0xff] %vm408_vm0, %v1248_v58 }
 0x5eb   : > { %v1232_v4 = vld [vmem:[%s2031_s27 + $0x50] sm:$0xff]  ;;  %1265 = vst.msk [vmem:[%s2031_s27 + $0x20] sm:$0xff] %vm408_vm0, %v1249_v59  ;;  %v1253_v5 = vadd.f32 %v1485_v52, %v1230_v2  ;;  %v1254_v6 = vadd.f32 %v1485_v52, %v1231_v3  ;;  %v1233_v8 = vld [vmem:[%s2031_s27 + $0x58] sm:$0xff]  ;;  %1266 = vst.msk [vmem:[%s2031_s27 + $0x28] sm:$0xff] %vm408_vm0, %v1250_v63 }
 0x5ec   : > { %v1255_v7 = vadd.f32 %v1485_v52, %v1232_v4  ;;  %v1234_v9 = vld [vmem:[%s2031_s27 + $0x60] sm:$0xff]  ;;  %v1235_v10 = vld [vmem:[%s2031_s27 + $0x68] sm:$0xff]  ;;  %1267 = vst.msk [vmem:[%s2031_s27 + $0x30] sm:$0xff] %vm408_vm0, %v1251_v0  ;;  %1268 = vst.msk [vmem:[%s2031_s27 + $0x38] sm:$0xff] %vm408_vm0, %v1252_v1  ;;  %v1256_v11 = vadd.f32 %v1485_v52, %v1233_v8 }
 0x5ed   : > { %v1257_v12 = vadd.f32 %v1485_v52, %v1234_v9  ;;  %v1258_v13 = vadd.f32 %v1485_v52, %v1235_v10  ;;  %v1236_v14 = vld [vmem:[%s2031_s27 + $0x70] sm:$0xff]  ;;  %v1237_v15 = vld [vmem:[%s2031_s27 + $0x78] sm:$0xff]  ;;  %1269 = vst.msk [vmem:[%s2031_s27 + $0x40] sm:$0xff] %vm408_vm0, %v1253_v5  ;;  %1270 = vst.msk [vmem:[%s2031_s27 + $0x48] sm:$0xff] %vm408_vm0, %v1254_v6 }
 0x5ee   : > { %1271 = vst.msk [vmem:[%s2031_s27 + $0x50] sm:$0xff] %vm408_vm0, %v1255_v7  ;;  %v1259_v16 = vadd.f32 %v1485_v52, %v1236_v14  ;;  %v1260_v17 = vadd.f32 %v1485_v52, %v1237_v15  ;;  %1272 = vst.msk [vmem:[%s2031_s27 + $0x58] sm:$0xff] %vm408_vm0, %v1256_v11 }
 0x5ef   : > { %1273 = vst.msk [vmem:[%s2031_s27 + $0x60] sm:$0xff] %vm408_vm0, %v1257_v12  ;;  %1274 = vst.msk [vmem:[%s2031_s27 + $0x68] sm:$0xff] %vm408_vm0, %v1258_v13 }
 0x5f0   : > { %1275 = vst.msk [vmem:[%s2031_s27 + $0x70] sm:$0xff] %vm408_vm0, %v1259_v16  ;;  %1276 = vst.msk [vmem:[%s2031_s27 + $0x78] sm:$0xff] %vm408_vm0, %v1260_v17 }
 0x5f1 PF: > { %s1487_s8 = sshll.u32 %s1885_s24, 4  ;;  %s1488_s17 = sshll.u32 %s1889_s25, 6 }
 0x5f2   : > { %s1301_s18 = sshll.u32 %s2234_s30, 4  ;;  %s1298_s19 = sadd.s32 %s1488_s17, %s1487_s8  ;;  %s2428_s18 = int_to_ptr.vmem [resolvable:$true] %s1301_s18 }
 0x5f3   : > { %s1489_s29 = sshll.u32 %s1298_s19, 7  ;;  %s2437_s13 = scalar_lea.sflag [#allocation3], %s303_s20 }
 0x5f4   : > { %s2433_s27 = scalar_lea.hbm %s2495_s6, %s1489_s29  ;;  %s1807_s14 = scalar_lea.vmem %s2428_s18, 2048 }
 0x5f5   : > { %p1808_p2 = scmp.ne.s32.totalorder %s2428_s18, %s1807_s14  ;;  %s1906_s24 = smov [#allocation2]  }
 0x5f6   : > { %s1811_s25 = sshll.u32 %s1906_s24, 4  ;;  %s1812_s25 = int_to_ptr.vmem [resolvable:$false] %s1811_s25 }
 0x5f7   : > { %p1809_p4 = pnand %p1808_p2, %p1995_p3  ;;  %s1813_s30 = scalar_lea.vmem %s1812_s25, 4096 }
 0x5f8   : > { %p1814_p6 = scmp.lt.s32.totalorder %s2428_s18, %s1812_s25  ;;  %p1815_p7 = scmp.lt.s32.totalorder %s1813_s30, %s1807_s14 }
 0x5f9   : > { %p1810_p5 = pneg %p1809_p4 }
 0x5fa   : > { %p1816_p9 = por %p1815_p7, %p1814_p6 }
 0x5fc   : > { %p1817_p10 = pnand %p1816_p9, %p1810_p5 }
 0x5fe   : > { %1820 = shalt.err (!%p1817_p10)
}
 0x5ff   : > { %s1821_s20 = scalar_lea.hbm %s2433_s27, 2048  ;;  %s1825_s8 = scalar_lea.hbm %s2495_s6, 16384 }
 0x600   : > { %p1822_p11 = scmp.ne.s32.totalorder %s2433_s27, %s1821_s20  ;;  %p1826_p0 = scmp.lt.u32.totalorder %s2433_s27, %s2495_s6 }
 0x601   : > { %p1827_p1 = scmp.lt.u32.totalorder %s1825_s8, %s1821_s20  ;;  %p1829_p4 = scmp.lt.u32.totalorder %s1821_s20, %s2433_s27 }
 0x602   : > { %p1823_p12 = pnand %p1822_p11, %p1995_p3 }
 0x603   : > { %p1828_p2 = por %p1827_p1, %p1826_p0 }
 0x604   : > { %p1824_p13 = pneg %p1823_p12 }
 0x605   : > { %p1830_p5 = por %p1829_p4, %p1828_p2 }
 0x607   : > { %p1831_p6 = pnand %p1830_p5, %p1824_p13 }
 0x609   : > { %1834 = shalt.err (!%p1831_p6)
}
 0x60a   : > { %s1907_s29 = smov 128   ;;  %s1908_s9 = smov 8  }
 0x60b   : > { %1657 = dma.vmem_to_hbm [thread:$0]  (%p1995_p3), %s2428_s18, 2048, %s2433_s27, %s2437_s13, %s1907_s29, %s1907_s29, %s1908_s9  }
 0x60c PF: > { %p1663_p7 = scmp.ge.s32.totalorder %s1901_s28, 2  ;;  %s1324_s12 = sand.u32 1, %s1873_s21  }
 0x60d   : > { %s1325_s14 = scalar_lea.sflag [#allocation3], %s1324_s12 }
 0x60e   : > { %p1660_p9 = pnand %p1663_p7, %p2004_p8 }
 0x610   : > { %1868 = dma.done.wait (!%p1660_p9), %s1325_s14, 2048  }
 0x611   : > { %1870 = vsyncadd (!%p1660_p9), %s1325_s14, 4294965248  ;;  %s20_s28 = sadd.s32 1, %s1901_s28   ;;  %s2504_s25 = sld [smem:[#allocation5_spill]] }
 0x612   : > { %p17_p10 = scmp.ge.s32.totalorder %s20_s28, 10   ;;  %s2505_s10 = sld [smem:[#allocation6_spill]] }
 0x613   : > { %s2506_s27 = sld [smem:[#allocation7_spill]]  ;;  %s2507_s21 = smov %s1877_s22 }
 0x614   : > { %s2508_s22 = smov %s1881_s23  ;;  %s2509_s23 = smov %s2013_s15 }
 0x615   : > { %s2510_s24 = smov %s1893_s26  ;;  %19 = sbr.rel (!%p17_p10) target bundleno = 5 (0x5), region = 104 }
 0x618   : > { %s2511_s26 = smov %s2505_s10 }
 0x61c   :  { %1330 = vsyncpa [#allocation3], 1 }
 0x61d   :  { %1332 = vsyncpa [#allocation3 + $0x1], 1 }

</bundles_post_ra>
